<compile_context>
chip_gen: v7x
topology: tpu7x:2x2x1
jax: 0.10.0
libtpu: 0.0.40
codegen_flags: <defaults>
</compile_context>

<pallas_src>
import jax
import jax.numpy as jnp
from jax.experimental import pallas as pl
from jax.experimental.pallas import tpu as pltpu


def _round_up(x, m):
    return ((x + m - 1) // m) * m


def make_smooth_leaky_relu(
    negative_slope=0.2,
    *,
    block_bytes=4 << 20,         # per-buffer VMEM tile target (~4 MiB)
    min_pallas_bytes=256 << 10,  # below this, a fused jnp expression wins
    vmem_limit_bytes=32 << 20,   # 4 buffers x 4 MiB fits; OK on v5e/v6e/v7x
):
    """Returns fwd(x) computing SmoothLeakyReLU elementwise on any-shaped x."""
    c1 = (1.0 + negative_slope) / 2.0
    c2 = (1.0 - negative_slope) / 2.0

    def kernel(x_ref, o_ref):
        x = x_ref[...]
        # bf16 stays native (bf16 VPU/EUP on v6e/v7x); other narrow/odd dtypes
        # upcast to f32 for the math.
        if x.dtype != jnp.float32 and x.dtype != jnp.bfloat16:
            x = x.astype(jnp.float32)
        # (1+a)/2*x + (1-a)/2*x*(2*sigmoid(x)-1)  ==  x*(c1 + c2*tanh(x/2))
        o_ref[...] = (x * (c1 + c2 * jnp.tanh(0.5 * x))).astype(o_ref.dtype)

    def _jnp_fallback(x):
        xf = x if x.dtype in (jnp.float32, jnp.bfloat16) else x.astype(jnp.float32)
        return (xf * (c1 + c2 * jnp.tanh(0.5 * xf))).astype(x.dtype)

    def fwd(x):
        orig_shape = x.shape
        dtype = x.dtype
        n = x.size
        if n == 0:
            return x
        itemsize = jnp.dtype(dtype).itemsize

        # Small-input fast path: launch + reshape glue dwarfs the work.
        if n * itemsize < min_pallas_bytes:
            return _jnp_fallback(x)

        # Sublane granularity: f32 -> 8, bf16 -> 16, int8/fp8 -> 32.
        # (max(1, ...) guards 8-byte dtypes from a divide-by-zero.)
        sublane = 8 * max(1, 4 // itemsize)

        flat = x.reshape(-1)

        # Lane-dense column count that divides n exactly (no pad) if possible.
        cols = None
        for cand in (512, 256, 128):
            if n % cand == 0:
                cols = cand
                break
        pad = 0
        if cols is None:
            # Last resort: pad to a whole number of lane-dense rows.
            cols = 512
            pad = _round_up(n, cols) - n
            flat = jnp.pad(flat, (0, pad))
        rows = (n + pad) // cols
        x2d = flat.reshape(rows, cols)

        # Row-tile budget from bytes so block size stays ~block_bytes for any
        # dtype / column choice.
        budget_rows = _round_up(max(1, block_bytes // (cols * itemsize)), sublane)

        # Force >= 2 grid steps whenever there is enough work so the "parallel"
        # axis can split across both TensorCores on v7x (harmless on v5e/v6e).
        steps = pl.cdiv(rows, budget_rows)
        if rows >= 2 * sublane:
            steps = max(steps, 2)
        tile_rows = _round_up(pl.cdiv(rows, steps), sublane)

        if tile_rows >= rows:
            # Single block covering the full array (always a legal block shape).
            block_rows, grid = rows, 1
        else:
            # Partial last block (if any) is masked by Pallas.
            block_rows, grid = tile_rows, pl.cdiv(rows, tile_rows)

        out2d = pl.pallas_call(
            kernel,
            out_shape=jax.ShapeDtypeStruct((rows, cols), dtype),
            grid=(grid,),
            in_specs=[pl.BlockSpec((block_rows, cols), lambda i: (i, 0))],
            out_specs=pl.BlockSpec((block_rows, cols), lambda i: (i, 0)),
            compiler_params=pltpu.CompilerParams(
                dimension_semantics=("parallel",),
                vmem_limit_bytes=vmem_limit_bytes,
            ),
        )(x2d)

        out = out2d.reshape(-1)
        if pad:
            out = out[:n]
        return out.reshape(orig_shape)

    return fwd


def smooth_leaky_relu_reference(x, negative_slope=0.2):
    """Pure-JAX reference mirroring the PyTorch forward literally."""
    a = negative_slope
    x1 = (1 + a) / 2 * x
    x2 = (1 - a) / 2 * x * (2 * jax.nn.sigmoid(x) - 1)
    return x1 + x2


if __name__ == "__main__":
    negative_slope = 0.2
    key = jax.random.PRNGKey(0)

    # Force the Pallas path even for the small demo tensor.
    fwd = make_smooth_leaky_relu(negative_slope, min_pallas_bytes=0)

    # 1) Canonical small input (no padding: 2048 % 512 == 0, single block).
    k1, k2, k3, k4 = jax.random.split(key, 4)
    x = jax.random.normal(k1, (2, 4, 16, 16), dtype=jnp.float32)
    out = jax.block_until_ready(fwd(x))
    ref = smooth_leaky_relu_reference(x, negative_slope)
    assert out.shape == x.shape, out.shape
    assert jnp.allclose(out, ref, rtol=1e-5, atol=1e-6), float(
        jnp.max(jnp.abs(out - ref)))

    # 2) Multi-step grid with a partial (masked) last block.
    x2 = jax.random.normal(k2, (2, 4, 16, 160), dtype=jnp.float32)
    out2 = jax.block_until_ready(fwd(x2))
    ref2 = smooth_leaky_relu_reference(x2, negative_slope)
    assert jnp.allclose(out2, ref2, rtol=1e-5, atol=1e-6), float(
        jnp.max(jnp.abs(out2 - ref2)))

    # 3) Last-resort pad path (n not a multiple of 128).
    x3 = jax.random.normal(k3, (5, 7, 13), dtype=jnp.float32)
    out3 = jax.block_until_ready(fwd(x3))
    ref3 = smooth_leaky_relu_reference(x3, negative_slope)
    assert out3.shape == x3.shape
    assert jnp.allclose(out3, ref3, rtol=1e-5, atol=1e-6), float(
        jnp.max(jnp.abs(out3 - ref3)))

    # 4) bf16 input computed natively in bf16.
    x4 = jax.random.normal(k4, (2, 4, 16, 16), dtype=jnp.bfloat16)
    out4 = jax.block_until_ready(fwd(x4))
    ref4 = smooth_leaky_relu_reference(x4.astype(jnp.float32), negative_slope)
    assert jnp.allclose(out4.astype(jnp.float32), ref4, rtol=5e-2, atol=6e-2), float(
        jnp.max(jnp.abs(out4.astype(jnp.float32) - ref4)))

    # 5) Default factory: small-input jnp fast path, parity with the kernel.
    fwd_auto = make_smooth_leaky_relu(negative_slope)
    out5 = jax.block_until_ready(fwd_auto(x))
    assert jnp.allclose(out5, ref, rtol=1e-5, atol=1e-6)

    print("KERNEL_OK")
</pallas_src>

<mosaic_0001>
module attributes {stable_mosaic.version = 11 : i64} {
  func.func @kernel(%arg0: i32, %arg1: memref<4x512xf32, #tpu.memory_space<vmem>>, %arg2: memref<4x512xf32, #tpu.memory_space<vmem>>) attributes {dimension_semantics = [#tpu.dimension_semantics<parallel>], iteration_bounds = array<i64: 1>, scalar_prefetch = 0 : i64, scratch_operands = 0 : i64, tpu.core_type = #tpu.core_type<tc>, window_params = [{transform_indices = @transform_0, window_bounds = array<i64: 4, 512>}, {transform_indices = @transform_1, window_bounds = array<i64: 4, 512>}]} {
    %c0 = arith.constant 0 : index
    %c0_0 = arith.constant 0 : index
    %0 = vector.load %arg1[%c0, %c0_0] : memref<4x512xf32, #tpu.memory_space<vmem>>, vector<4x512xf32>
    %cst = arith.constant 5.000000e-01 : f32
    %1 = vector.broadcast %cst : f32 to vector<4x512xf32>
    %2 = arith.mulf %1, %0 : vector<4x512xf32>
    %3 = math.tanh %2 : vector<4x512xf32>
    %cst_1 = arith.constant 4.000000e-01 : f32
    %4 = vector.broadcast %cst_1 : f32 to vector<4x512xf32>
    %5 = arith.mulf %4, %3 : vector<4x512xf32>
    %cst_2 = arith.constant 6.000000e-01 : f32
    %6 = vector.broadcast %cst_2 : f32 to vector<4x512xf32>
    %7 = arith.addf %6, %5 : vector<4x512xf32>
    %8 = arith.mulf %0, %7 : vector<4x512xf32>
    %c0_3 = arith.constant 0 : index
    %c0_4 = arith.constant 0 : index
    %9 = vector.load %arg2[%c0_3, %c0_4] : memref<4x512xf32, #tpu.memory_space<vmem>>, vector<4x512xf32>
    tpu.vector_store %arg2[%c0_3, %c0_4], %8 {strides = array<i32>} : memref<4x512xf32, #tpu.memory_space<vmem>>, vector<4x512xf32>,
    return
  }
  func.func @transform_0(%arg0: i32) -> (i32, i32) {
    %c0_i32 = arith.constant 0 : i32
    %c0_i32_0 = arith.constant 0 : i32
    return %arg0, %c0_i32 : i32, i32
  }
  func.func @transform_1(%arg0: i32) -> (i32, i32) {
    %c0_i32 = arith.constant 0 : i32
    %c0_i32_0 = arith.constant 0 : i32
    return %arg0, %c0_i32 : i32, i32
  }
}

</mosaic_0001>

<bundles_post_ra>
// kernel: tpu_custom_call.1
= control target key start
LH: loop header
LB: loop body
LE: loop exit
PB: predicated region body
PF: predicated region fallthrough
CT: control target
= control target key end

     0   :  { %6 = vsyncpa [#allocation3], 0  ;;  %s140_s0 = inlined_call_operand.hbm [shape: f32[4,512], index: 0, kind: input, shape index: {}]   ;;  %s141_s1 = inlined_call_operand.hbm [shape: f32[4,512], index: 1, kind: output, shape index: {}]  }
   0x1   :  { %7 = vsyncpa [#allocation4], 0  ;;  %s104_s6 = smov [#allocation2]   ;;  %s56_s10 = scalar_lea.hbm %s140_s0, 256 }
   0x2   :  { %s14_s7 = sshll.u32 %s104_s6, 4  ;;  %p57_p0 = scmp.ne.s32.totalorder %s140_s0, %s56_s10  ;;  %s15_s7 = int_to_ptr.vmem [resolvable:$true] %s14_s7 }
   0x3   :  { %p60_p1 = scmp.lt.u32.totalorder %s56_s10, %s140_s0 }
   0x5   :  { %p62_p2 = pnand %p60_p1, %p57_p0 }
   0x7   :  { %65 = shalt.err (!%p62_p2)
}
   0x8   :  { %s66_s15 = scalar_lea.vmem %s15_s7, 256  ;;  %p71_p4 = scmp.lt.s32.totalorder %s15_s7, %s15_s7 }
   0x9   :  { %p67_p3 = scmp.ne.s32.totalorder %s15_s7, %s66_s15  ;;  %p72_p5 = scmp.lt.s32.totalorder %s66_s15, %s66_s15 }
   0xb   :  { %p73_p6 = por %p72_p5, %p71_p4 }
   0xd   :  { %p74_p7 = pnand %p73_p6, %p67_p3 }
   0xf   :  { %77 = shalt.err (!%p74_p7)
}
  0x10   :  { %17 = dma.hbm_to_vmem [thread:$0]  %s140_s0, 256, %s15_s7, [#allocation3]  }
  0x11   :  { %100 = dma.done.wait [#allocation3], 256  }
  0x12   :  { %101 = vsyncadd [#allocation3], 4294967040  ;;  %v21_v0 = vld [vmem:[#allocation2] sm:$0xff]  ;;  %v22_v1 = vld [vmem:[#allocation2 + $0x8] sm:$0xff]  ;;  %s105_s18 = smov [#allocation5]  }
  0x13   :  { %v23_v2 = vmul.f32 0.5, %v21_v0  ;;  %v24_v3 = vmul.f32 0.5, %v22_v1  ;;  %s41_s19 = sshll.u32 %s105_s18, 4  ;;  %s42_s19 = int_to_ptr.vmem [resolvable:$true] %s41_s19 }
  0x14   :  { %s78_s0 = scalar_lea.vmem %s42_s19, 256  ;;  %p83_p9 = scmp.lt.s32.totalorder %s42_s19, %s42_s19 }
  0x15   :  { %52 = vtanh.f32 %v23_v2  ;;  %p79_p8 = scmp.ne.s32.totalorder %s42_s19, %s78_s0  ;;  %p84_p10 = scmp.lt.s32.totalorder %s78_s0, %s78_s0 }
  0x16   :  { %54 = vtanh.f32 %v24_v3 }
  0x17   :  { %p85_p11 = por %p84_p10, %p83_p9 }
  0x19   :  { %p86_p12 = pnand %p85_p11, %p79_p8 }
  0x1f   :  { %v53_v4 = vpop.eup %52 }
  0x20   :  { %v55_v5 = vpop.eup %54  ;;  %v27_v6 = vmul.f32 0.4, %v53_v4 }
  0x21   :  { %v28_v7 = vmul.f32 0.4, %v55_v5 }
  0x22   :  { %v29_v8 = vadd.f32 0.6, %v27_v6 }
  0x23   :  { %v30_v9 = vadd.f32 0.6, %v28_v7 }
  0x24   :  { %v31_v10 = vmul.f32 %v29_v8, %v21_v0 }
  0x25   :  { %v32_v11 = vmul.f32 %v30_v9, %v22_v1 }
  0x26   :  { %33 = vst [vmem:[#allocation5] sm:$0xff] %v31_v10 }
  0x27   :  { %34 = vst [vmem:[#allocation5 + $0x8] sm:$0xff] %v32_v11 }
  0x28   :  { %89 = shalt.err (!%p86_p12)
}
  0x29   :  { %s90_s22 = scalar_lea.hbm %s141_s1, 256 }
  0x2a   :  { %p91_p13 = scmp.ne.s32.totalorder %s141_s1, %s90_s22  ;;  %p94_p0 = scmp.lt.u32.totalorder %s90_s22, %s141_s1 }
  0x2c   :  { %p96_p1 = pnand %p94_p0, %p91_p13 }
  0x2e   :  { %99 = shalt.err (!%p96_p1)
}
  0x2f   :  { %44 = dma.vmem_to_hbm [thread:$0]  %s42_s19, 256, %s141_s1, [#allocation4]  }
  0x30   :  { %102 = dma.done.wait [#allocation4], 256  }
  0x31   :  { %103 = vsyncadd [#allocation4], 4294967040 }
  0x32   :  { %48 = vsyncpa [#allocation3], 1 }
  0x33   :  { %49 = vsyncpa [#allocation4], 1 }

</bundles_post_ra>
